<compile_context>
chip_gen: v7x
topology: tpu7x:2x2x1
jax: 0.10.0
libtpu: 0.0.40
codegen_flags: <defaults>
</compile_context>

<pallas_src>
import math

import jax
import jax.numpy as jnp
from jax.experimental import pallas as pl
from jax.experimental.pallas import tpu as pltpu

LEAKY_SLOPE = 0.01  # torch.nn.LeakyReLU default negative_slope
BN_EPS = 1e-5       # torch.nn.BatchNorm1d default eps

_DIMS = [(10, 32), (32, 64), (64, 128), (128, 256), (256, 64), (64, 4)]
_OUT_DIMS = tuple(d[1] for d in _DIMS)  # (32, 64, 128, 256, 64, 4)


def _round_up(n, m):
    return ((n + m - 1) // m) * m


def _leaky(v):
    return jnp.where(v > 0, v, LEAKY_SLOPE * v)


def mlp_kernel(x_ref, w1_ref, w2_ref, w3_ref, w4_ref, w5_ref, w6_ref, b_ref, o_ref):
    """One batch tile: (TB, 10) -> (TB, 4). Weights are VMEM-resident (constant
    index_map). BN is pre-folded into w2/b2; Dropout is identity in eval mode."""
    wdt = w1_ref.dtype  # matmul input dtype (f32 or bf16); accumulation is f32.
    x = x_ref[...].astype(wdt)

    # Linear(10, 32) + LeakyReLU
    h = jnp.dot(x, w1_ref[...], preferred_element_type=jnp.float32) + b_ref[0:1, :32]
    h = _leaky(h)

    # BatchNorm1d(32) folded into w2/b2 on host; Dropout(0.2) = identity (eval).
    # Linear(32, 64) + LeakyReLU
    h = _leaky(jnp.dot(h.astype(wdt), w2_ref[...],
                       preferred_element_type=jnp.float32) + b_ref[1:2, :64])
    # Linear(64, 128) + LeakyReLU
    h = _leaky(jnp.dot(h.astype(wdt), w3_ref[...],
                       preferred_element_type=jnp.float32) + b_ref[2:3, :128])
    # Linear(128, 256) + LeakyReLU
    h = _leaky(jnp.dot(h.astype(wdt), w4_ref[...],
                       preferred_element_type=jnp.float32) + b_ref[3:4, :256])
    # Dropout(0.2) = identity (eval); Linear(256, 64) + LeakyReLU
    h = _leaky(jnp.dot(h.astype(wdt), w5_ref[...],
                       preferred_element_type=jnp.float32) + b_ref[4:5, :64])
    # Linear(64, 4)
    o_ref[...] = jnp.dot(h.astype(wdt), w6_ref[...],
                         preferred_element_type=jnp.float32) + b_ref[5:6, :4]


def init_torch_params(key):
    """Params mirroring torch defaults (uniform ±1/sqrt(fan_in)) plus non-trivial
    BatchNorm running stats / affine params so the BN fold is actually exercised."""
    params = []
    for fan_in, fan_out in _DIMS:
        key, kw, kb = jax.random.split(key, 3)
        bound = 1.0 / math.sqrt(fan_in)
        w = jax.random.uniform(kw, (fan_in, fan_out), jnp.float32, -bound, bound)
        b = jax.random.uniform(kb, (fan_out,), jnp.float32, -bound, bound)
        params.append((w, b))
    key, kg, kbt, km, kv = jax.random.split(key, 5)
    gamma = jax.random.uniform(kg, (32,), jnp.float32, 0.5, 1.5)
    beta = 0.1 * jax.random.normal(kbt, (32,), jnp.float32)
    rmean = 0.1 * jax.random.normal(km, (32,), jnp.float32)
    rvar = jax.random.uniform(kv, (32,), jnp.float32, 0.5, 1.5)
    return params, (gamma, beta, rmean, rvar)


def fold_params(params, bn_params, weight_dtype=jnp.bfloat16):
    """Fold eval-mode BN into the Linear that follows it and pack biases.

    BN(h) = h*a + c with a = gamma*rsqrt(rvar+eps), c = beta - rmean*a, so
    BN(h) @ W2 + b2 == h @ (a[:,None]*W2) + (c @ W2 + b2).
    """
    (w1, b1), (w2, b2), (w3, b3), (w4, b4), (w5, b5), (w6, b6) = params
    gamma, beta, rmean, rvar = bn_params
    a = gamma * jax.lax.rsqrt(rvar + BN_EPS)          # (32,)
    c = beta - rmean * a                              # (32,)
    w2f = a[:, None] * w2
    b2f = b2 + c @ w2

    weights = tuple(w.astype(weight_dtype) for w in (w1, w2f, w3, w4, w5, w6))

    # Pack all biases into one (6, 256) f32 operand (lane offset 0 per row).
    biases = (b1, b2f, b3, b4, b5, b6)
    bpack = jnp.zeros((len(biases), 256), jnp.float32)
    for i, b in enumerate(biases):
        bpack = bpack.at[i, : b.shape[0]].set(b.astype(jnp.float32))
    return weights, bpack


def neural_network_forward(x, weights, bpack, *, block_batch=512):
    """Batch-tiled Pallas forward. Works for any batch size (pads to the tile)."""
    w1, w2, w3, w4, w5, w6 = weights
    B, F = x.shape
    assert F == 10

    # Batch tile: multiple of 8 (f32 sublanes); capped by the (padded) batch.
    TB = min(_round_up(block_batch, 8), _round_up(max(B, 8), 8))
    Bp = _round_up(B, TB)
    if Bp != B:
        x = jnp.pad(x, ((0, Bp - B), (0, 0)))   # zero rows are harmless (eval mode)

    batch_map = lambda i: (i, 0)
    const_map = lambda i: (0, 0)                 # weights fetched once, stay resident
    full = lambda a: pl.BlockSpec(a.shape, const_map)

    out = pl.pallas_call(
        mlp_kernel,
        out_shape=jax.ShapeDtypeStruct((Bp, 4), jnp.float32),
        grid=(Bp // TB,),
        in_specs=[
            pl.BlockSpec((TB, F), batch_map),
            full(w1), full(w2), full(w3), full(w4), full(w5), full(w6),
            full(bpack),
        ],
        out_specs=pl.BlockSpec((TB, 4), batch_map),
        compiler_params=pltpu.CompilerParams(
            # Batch tiles are independent -> shard across both TCs on v7x.
            dimension_semantics=("parallel",),
        ),
    )(x, w1, w2, w3, w4, w5, w6, bpack)
    return out[:B]


def reference_forward(x, params, bn_params):
    """Pure-JAX f32 reference matching the PyTorch module exactly (eval mode)."""
    (w1, b1), (w2, b2), (w3, b3), (w4, b4), (w5, b5), (w6, b6) = params
    gamma, beta, rmean, rvar = bn_params
    h = _leaky(x @ w1 + b1)
    h = (h - rmean) * jax.lax.rsqrt(rvar + BN_EPS) * gamma + beta
    h = _leaky(h @ w2 + b2)
    h = _leaky(h @ w3 + b3)
    h = _leaky(h @ w4 + b4)
    h = _leaky(h @ w5 + b5)
    return h @ w6 + b6


def folded_reference(x, weights, bpack):
    """Pure-JAX forward with the exact same folded params / numerics as the kernel."""
    wdt = weights[0].dtype
    h = x
    for i, (w, n) in enumerate(zip(weights, _OUT_DIMS)):
        h = jnp.dot(h.astype(wdt), w, preferred_element_type=jnp.float32) + bpack[i, :n]
        if i < len(weights) - 1:
            h = _leaky(h)
    return h


if __name__ == "__main__":
    key = jax.random.PRNGKey(0)
    kp, kx = jax.random.split(key)
    params, bn_params = init_torch_params(kp)

    batch = 64
    x = jax.random.normal(kx, (batch, 10), jnp.float32)
    ref = reference_forward(x, params, bn_params)

    # f32 weights, small batch tile (TB=16) to exercise the 4-step pipelined grid.
    w_f32, bpack_f32 = fold_params(params, bn_params, jnp.float32)
    out_f32 = jax.block_until_ready(
        neural_network_forward(x, w_f32, bpack_f32, block_batch=16))
    assert out_f32.shape == (batch, 4)
    assert jnp.allclose(out_f32, folded_reference(x, w_f32, bpack_f32),
                        atol=2e-4, rtol=2e-4), "f32 kernel vs same-math reference"
    assert jnp.allclose(out_f32, ref, atol=1e-2, rtol=1e-2), "BN-fold semantics"

    # bf16 weights (recommended on v6e/v7x); ragged batch exercises the pad path.
    w_bf16, bpack_bf16 = fold_params(params, bn_params, jnp.bfloat16)
    x2 = x[:37]
    out_bf16 = jax.block_until_ready(
        neural_network_forward(x2, w_bf16, bpack_bf16, block_batch=512))
    assert out_bf16.shape == (37, 4)
    assert jnp.allclose(out_bf16, ref[:37], atol=5e-2, rtol=5e-2), "bf16 kernel"

    print("KERNEL_OK")
</pallas_src>

<mosaic_0001>
module attributes {stable_mosaic.version = 11 : i64} {
  func.func @mlp_kernel(%arg0: i32, %arg1: memref<16x10xf32, #tpu.memory_space<vmem>>, %arg2: memref<10x32xf32, #tpu.memory_space<vmem>>, %arg3: memref<32x64xf32, #tpu.memory_space<vmem>>, %arg4: memref<64x128xf32, #tpu.memory_space<vmem>>, %arg5: memref<128x256xf32, #tpu.memory_space<vmem>>, %arg6: memref<256x64xf32, #tpu.memory_space<vmem>>, %arg7: memref<64x4xf32, #tpu.memory_space<vmem>>, %arg8: memref<6x256xf32, #tpu.memory_space<vmem>>, %arg9: memref<16x4xf32, #tpu.memory_space<vmem>>) attributes {dimension_semantics = [#tpu.dimension_semantics<parallel>], iteration_bounds = array<i64: 4>, scalar_prefetch = 0 : i64, scratch_operands = 0 : i64, tpu.core_type = #tpu.core_type<tc>, window_params = [{transform_indices = @transform_0, window_bounds = array<i64: 16, 10>}, {pipeline_mode = #tpu.pipeline_mode<synchronous>, transform_indices = @transform_1, window_bounds = array<i64: 10, 32>}, {pipeline_mode = #tpu.pipeline_mode<synchronous>, transform_indices = @transform_2, window_bounds = array<i64: 32, 64>}, {pipeline_mode = #tpu.pipeline_mode<synchronous>, transform_indices = @transform_3, window_bounds = array<i64: 64, 128>}, {pipeline_mode = #tpu.pipeline_mode<synchronous>, transform_indices = @transform_4, window_bounds = array<i64: 128, 256>}, {pipeline_mode = #tpu.pipeline_mode<synchronous>, transform_indices = @transform_5, window_bounds = array<i64: 256, 64>}, {pipeline_mode = #tpu.pipeline_mode<synchronous>, transform_indices = @transform_6, window_bounds = array<i64: 64, 4>}, {pipeline_mode = #tpu.pipeline_mode<synchronous>, transform_indices = @transform_7, window_bounds = array<i64: 6, 256>}, {transform_indices = @transform_8, window_bounds = array<i64: 16, 4>}]} {
    %c0 = arith.constant 0 : index
    %c0_0 = arith.constant 0 : index
    %0 = vector.load %arg1[%c0, %c0_0] : memref<16x10xf32, #tpu.memory_space<vmem>>, vector<16x10xf32>
    %c0_1 = arith.constant 0 : index
    %c0_2 = arith.constant 0 : index
    %1 = vector.load %arg2[%c0_1, %c0_2] : memref<10x32xf32, #tpu.memory_space<vmem>>, vector<10x32xf32>
    %cst = arith.constant dense<0.000000e+00> : vector<16x32xf32>
    %2 = tpu.matmul %0, %1, %cst {dimension_numbers = #tpu.dot_dimension_numbers<[1], [0], [0], [1], [0, 0, 1, 1], [], []>} : vector<16x10xf32>, vector<10x32xf32>, vector<16x32xf32> -> vector<16x32xf32>
    %c0_3 = arith.constant 0 : index
    %c0_4 = arith.constant 0 : index
    %3 = vector.load %arg8[%c0_3, %c0_4] : memref<6x256xf32, #tpu.memory_space<vmem>>, vector<1x32xf32>
    %4 = vector.broadcast %3 : vector<1x32xf32> to vector<16x32xf32>
    %5 = arith.addf %2, %4 : vector<16x32xf32>
    %cst_5 = arith.constant 0.000000e+00 : f32
    %6 = vector.broadcast %cst_5 : f32 to vector<16x32xf32>
    %7 = arith.cmpf ogt, %5, %6 : vector<16x32xf32>
    %cst_6 = arith.constant 0.00999999977 : f32
    %8 = vector.broadcast %cst_6 : f32 to vector<16x32xf32>
    %9 = arith.mulf %8, %5 : vector<16x32xf32>
    %10 = arith.select %7, %5, %9 : vector<16x32xi1>, vector<16x32xf32>
    %c0_7 = arith.constant 0 : index
    %c0_8 = arith.constant 0 : index
    %11 = vector.load %arg3[%c0_7, %c0_8] : memref<32x64xf32, #tpu.memory_space<vmem>>, vector<32x64xf32>
    %cst_9 = arith.constant dense<0.000000e+00> : vector<16x64xf32>
    %12 = tpu.matmul %10, %11, %cst_9 {dimension_numbers = #tpu.dot_dimension_numbers<[1], [0], [0], [1], [0, 0, 1, 1], [], []>} : vector<16x32xf32>, vector<32x64xf32>, vector<16x64xf32> -> vector<16x64xf32>
    %c1 = arith.constant 1 : index
    %c0_10 = arith.constant 0 : index
    %13 = vector.load %arg8[%c1, %c0_10] : memref<6x256xf32, #tpu.memory_space<vmem>>, vector<1x64xf32>
    %14 = vector.broadcast %13 : vector<1x64xf32> to vector<16x64xf32>
    %15 = arith.addf %12, %14 : vector<16x64xf32>
    %cst_11 = arith.constant 0.000000e+00 : f32
    %16 = vector.broadcast %cst_11 : f32 to vector<16x64xf32>
    %17 = arith.cmpf ogt, %15, %16 : vector<16x64xf32>
    %cst_12 = arith.constant 0.00999999977 : f32
    %18 = vector.broadcast %cst_12 : f32 to vector<16x64xf32>
    %19 = arith.mulf %18, %15 : vector<16x64xf32>
    %20 = arith.select %17, %15, %19 : vector<16x64xi1>, vector<16x64xf32>
    %c0_13 = arith.constant 0 : index
    %c0_14 = arith.constant 0 : index
    %21 = vector.load %arg4[%c0_13, %c0_14] : memref<64x128xf32, #tpu.memory_space<vmem>>, vector<64x128xf32>
    %cst_15 = arith.constant dense<0.000000e+00> : vector<16x128xf32>
    %22 = tpu.matmul %20, %21, %cst_15 {dimension_numbers = #tpu.dot_dimension_numbers<[1], [0], [0], [1], [0, 0, 1, 1], [], []>} : vector<16x64xf32>, vector<64x128xf32>, vector<16x128xf32> -> vector<16x128xf32>
    %c2 = arith.constant 2 : index
    %c0_16 = arith.constant 0 : index
    %23 = vector.load %arg8[%c2, %c0_16] : memref<6x256xf32, #tpu.memory_space<vmem>>, vector<1x128xf32>
    %24 = vector.broadcast %23 : vector<1x128xf32> to vector<16x128xf32>
    %25 = arith.addf %22, %24 : vector<16x128xf32>
    %cst_17 = arith.constant 0.000000e+00 : f32
    %26 = vector.broadcast %cst_17 : f32 to vector<16x128xf32>
    %27 = arith.cmpf ogt, %25, %26 : vector<16x128xf32>
    %cst_18 = arith.constant 0.00999999977 : f32
    %28 = vector.broadcast %cst_18 : f32 to vector<16x128xf32>
    %29 = arith.mulf %28, %25 : vector<16x128xf32>
    %30 = arith.select %27, %25, %29 : vector<16x128xi1>, vector<16x128xf32>
    %c0_19 = arith.constant 0 : index
    %c0_20 = arith.constant 0 : index
    %31 = vector.load %arg5[%c0_19, %c0_20] : memref<128x256xf32, #tpu.memory_space<vmem>>, vector<128x256xf32>
    %cst_21 = arith.constant dense<0.000000e+00> : vector<16x256xf32>
    %32 = tpu.matmul %30, %31, %cst_21 {dimension_numbers = #tpu.dot_dimension_numbers<[1], [0], [0], [1], [0, 0, 1, 1], [], []>} : vector<16x128xf32>, vector<128x256xf32>, vector<16x256xf32> -> vector<16x256xf32>
    %c3 = arith.constant 3 : index
    %c0_22 = arith.constant 0 : index
    %33 = vector.load %arg8[%c3, %c0_22] : memref<6x256xf32, #tpu.memory_space<vmem>>, vector<1x256xf32>
    %34 = vector.broadcast %33 : vector<1x256xf32> to vector<16x256xf32>
    %35 = arith.addf %32, %34 : vector<16x256xf32>
    %cst_23 = arith.constant 0.000000e+00 : f32
    %36 = vector.broadcast %cst_23 : f32 to vector<16x256xf32>
    %37 = arith.cmpf ogt, %35, %36 : vector<16x256xf32>
    %cst_24 = arith.constant 0.00999999977 : f32
    %38 = vector.broadcast %cst_24 : f32 to vector<16x256xf32>
    %39 = arith.mulf %38, %35 : vector<16x256xf32>
    %40 = arith.select %37, %35, %39 : vector<16x256xi1>, vector<16x256xf32>
    %c0_25 = arith.constant 0 : index
    %c0_26 = arith.constant 0 : index
    %41 = vector.load %arg6[%c0_25, %c0_26] : memref<256x64xf32, #tpu.memory_space<vmem>>, vector<256x64xf32>
    %cst_27 = arith.constant dense<0.000000e+00> : vector<16x64xf32>
    %42 = tpu.matmul %40, %41, %cst_27 {dimension_numbers = #tpu.dot_dimension_numbers<[1], [0], [0], [1], [0, 0, 1, 1], [], []>} : vector<16x256xf32>, vector<256x64xf32>, vector<16x64xf32> -> vector<16x64xf32>
    %c4 = arith.constant 4 : index
    %c0_28 = arith.constant 0 : index
    %43 = vector.load %arg8[%c4, %c0_28] : memref<6x256xf32, #tpu.memory_space<vmem>>, vector<1x64xf32>
    %44 = vector.broadcast %43 : vector<1x64xf32> to vector<16x64xf32>
    %45 = arith.addf %42, %44 : vector<16x64xf32>
    %cst_29 = arith.constant 0.000000e+00 : f32
    %46 = vector.broadcast %cst_29 : f32 to vector<16x64xf32>
    %47 = arith.cmpf ogt, %45, %46 : vector<16x64xf32>
    %cst_30 = arith.constant 0.00999999977 : f32
    %48 = vector.broadcast %cst_30 : f32 to vector<16x64xf32>
    %49 = arith.mulf %48, %45 : vector<16x64xf32>
    %50 = arith.select %47, %45, %49 : vector<16x64xi1>, vector<16x64xf32>
    %c0_31 = arith.constant 0 : index
    %c0_32 = arith.constant 0 : index
    %51 = vector.load %arg7[%c0_31, %c0_32] : memref<64x4xf32, #tpu.memory_space<vmem>>, vector<64x4xf32>
    %cst_33 = arith.constant dense<0.000000e+00> : vector<16x4xf32>
    %52 = tpu.matmul %50, %51, %cst_33 {dimension_numbers = #tpu.dot_dimension_numbers<[1], [0], [0], [1], [0, 0, 1, 1], [], []>} : vector<16x64xf32>, vector<64x4xf32>, vector<16x4xf32> -> vector<16x4xf32>
    %c5 = arith.constant 5 : index
    %c0_34 = arith.constant 0 : index
    %53 = vector.load %arg8[%c5, %c0_34] : memref<6x256xf32, #tpu.memory_space<vmem>>, vector<1x4xf32>
    %54 = vector.broadcast %53 : vector<1x4xf32> to vector<16x4xf32>
    %55 = arith.addf %52, %54 : vector<16x4xf32>
    %c0_35 = arith.constant 0 : index
    %c0_36 = arith.constant 0 : index
    %56 = vector.load %arg9[%c0_35, %c0_36] : memref<16x4xf32, #tpu.memory_space<vmem>>, vector<16x4xf32>
    tpu.vector_store %arg9[%c0_35, %c0_36], %55 {strides = array<i32>} : memref<16x4xf32, #tpu.memory_space<vmem>>, vector<16x4xf32>,
    return
  }
  func.func @transform_0(%arg0: i32) -> (i32, i32) {
    %c0_i32 = arith.constant 0 : i32
    %c0_i32_0 = arith.constant 0 : i32
    return %arg0, %c0_i32 : i32, i32
  }
  func.func @transform_1(%arg0: i32) -> (i32, i32) {
    %c0_i32 = arith.constant 0 : i32
    %c0_i32_0 = arith.constant 0 : i32
    %c0_i32_1 = arith.constant 0 : i32
    return %c0_i32, %c0_i32_0 : i32, i32
  }
  func.func @transform_2(%arg0: i32) -> (i32, i32) {
    %c0_i32 = arith.constant 0 : i32
    %c0_i32_0 = arith.constant 0 : i32
    %c0_i32_1 = arith.constant 0 : i32
    return %c0_i32, %c0_i32_0 : i32, i32
  }
  func.func @transform_3(%arg0: i32) -> (i32, i32) {
    %c0_i32 = arith.constant 0 : i32
    %c0_i32_0 = arith.constant 0 : i32
    %c0_i32_1 = arith.constant 0 : i32
    return %c0_i32, %c0_i32_0 : i32, i32
  }
  func.func @transform_4(%arg0: i32) -> (i32, i32) {
    %c0_i32 = arith.constant 0 : i32
    %c0_i32_0 = arith.constant 0 : i32
    %c0_i32_1 = arith.constant 0 : i32
    return %c0_i32, %c0_i32_0 : i32, i32
  }
  func.func @transform_5(%arg0: i32) -> (i32, i32) {
    %c0_i32 = arith.constant 0 : i32
    %c0_i32_0 = arith.constant 0 : i32
    %c0_i32_1 = arith.constant 0 : i32
    return %c0_i32, %c0_i32_0 : i32, i32
  }
  func.func @transform_6(%arg0: i32) -> (i32, i32) {
    %c0_i32 = arith.constant 0 : i32
    %c0_i32_0 = arith.constant 0 : i32
    %c0_i32_1 = arith.constant 0 : i32
    return %c0_i32, %c0_i32_0 : i32, i32
  }
  func.func @transform_7(%arg0: i32) -> (i32, i32) {
    %c0_i32 = arith.constant 0 : i32
    %c0_i32_0 = arith.constant 0 : i32
    %c0_i32_1 = arith.constant 0 : i32
    return %c0_i32, %c0_i32_0 : i32, i32
  }
  func.func @transform_8(%arg0: i32) -> (i32, i32) {
    %c0_i32 = arith.constant 0 : i32
    %c0_i32_0 = arith.constant 0 : i32
    return %arg0, %c0_i32 : i32, i32
  }
}

</mosaic_0001>

<bundles_post_ra>
// kernel: tpu_custom_call.1
= control target key start
LH: loop header
LB: loop body
LE: loop exit
PB: predicated region body
PF: predicated region fallthrough
CT: control target
= control target key end

     0   :  { %s1313_s27 = smov 0   ;;  %s1617_s0 = inlined_call_operand.vmem [shape: f32[64,10], index: 0, kind: input, shape index: {}]   ;;  %s1618_s1 = inlined_call_operand.vmem [shape: f32[10,32], index: 1, kind: input, shape index: {}]   ;;  %s1619_s2 = inlined_call_operand.vmem [shape: f32[32,64], index: 2, kind: input, shape index: {}]   ;;  %s1620_s3 = inlined_call_operand.vmem [shape: f32[64,128], index: 3, kind: input, shape index: {}]   ;;  %s1621_s4 = inlined_call_operand.vmem [shape: f32[128,256], index: 4, kind: input, shape index: {}]   ;;  %s1622_s5 = inlined_call_operand.vmem [shape: f32[256,64], index: 5, kind: input, shape index: {}]   ;;  %s1623_s6 = inlined_call_operand.vmem [shape: f32[64,4], index: 6, kind: input, shape index: {}]   ;;  %s1624_s7 = inlined_call_operand.vmem [shape: f32[6,256], index: 7, kind: input, shape index: {}]   ;;  %s1625_s8 = inlined_call_operand.vmem [shape: f32[64,4], index: 8, kind: output, shape index: {}]  }
   0x1 LB: > { %s993_s28 = sadd.s32 4294967295, %s1264_s27   ;;  %p997_p0 = scmp.ge.s32.totalorder %s1264_s27, 1  ;;  %s1264_s27 = sphi %s1313_s27, %s18_s27  }
   0x2   : > { %p263_p1 = scmp.lt.s32.totalorder %s1264_s27, 5 }
   0x4   : > { %p264_p2 = pnand %p997_p0, %p263_p1 }
   0x5   : > { %v311_v0 = vld [vmem:[%s1618_s1] sm:$0xff] (!%p264_p2)  ;;  %v312_v1 = vld [vmem:[%s1618_s1 + $0x8] sm:$0x3] (!%p264_p2)  ;;  %vm321_vm0 = vcmask (!%p264_p2), 1041408   ;;  %s998_s11 = sshll.u32 (!%p264_p2), %s993_s28, 1  ;;  %vm1266_vm1 = vmmov (!%p264_p2), 1  }
   0x6   : > { %267 = sbr.rel (%p264_p2) target bundleno = 1333 (0x535), region = 52  ;;  %v1138_v2 = vpack.c.bf16 (!%p264_p2), %v312_v1, %v311_v0  ;;  %vm1139_vm2 = vmpackc.low (!%p264_p2), %vm321_vm0, %vm1266_vm1  ;;  %p298_p3 = scmp.lt.s32.totalorder (!%p264_p2), %s998_s11, 7  ;;  %vm314_vm3 = vcmask (!%p264_p2), 80896   ;;  %v406_v5 = vld [vmem:[%s1619_s2] sm:$0xff] (!%p264_p2)  ;;  %v407_v6 = vld [vmem:[%s1619_s2 + $0x8] sm:$0xff] (!%p264_p2)  ;;  %vm411_vm6 = vcmask (!%p264_p2), 261120  }
   0x7   : > { %v1144_v7 = vpack.c.bf16 (!%p264_p2), %v407_v6, %v406_v5  ;;  %v408_v8 = vld [vmem:[%s1619_s2 + $0x10] sm:$0xff] (!%p264_p2)  ;;  %v409_v9 = vld [vmem:[%s1619_s2 + $0x18] sm:$0xff] (!%p264_p2)  ;;  %v499_v11 = vld [vmem:[%s1620_s3] sm:$0xff] (!%p264_p2)  ;;  %vm508_vm9 = vcmask (!%p264_p2), 523264  }
   0x8   : > { %1140 = vmatprep.subr.msk.bf16.mxu0 (!%p264_p2), %vm1139_vm2, %v1138_v2  ;;  %v1148_v10 = vpack.c.bf16 (!%p264_p2), %v409_v9, %v408_v8  ;;  %v500_v12 = vld [vmem:[%s1620_s3 + $0x8] sm:$0xff] (!%p264_p2)  ;;  %v501_v13 = vld [vmem:[%s1620_s3 + $0x10] sm:$0xff] (!%p264_p2)  ;;  %v502_v15 = vld [vmem:[%s1620_s3 + $0x18] sm:$0xff] (!%p264_p2) }
   0x9   : > { %1143 = vmatpush3.bf16.msk.msra.mxu0 (!%p264_p2), %vm1139_vm2, %v1138_v2  ;;  %1145 = vmatprep.subr.bf16.mxu1 (!%p264_p2), %v1144_v7  ;;  %v1152_v14 = vpack.c.bf16 (!%p264_p2), %v500_v12, %v499_v11  ;;  %v1156_v16 = vpack.c.bf16 (!%p264_p2), %v502_v15, %v501_v13  ;;  %v313_v17 = vld [vmem:[%s1624_s7] ss:$0 sm:$0xff] (!%p264_p2)  ;;  %v504_v27 = vld [vmem:[%s1620_s3 + $0x28] sm:$0xff] (!%p264_p2)  ;;  %v505_v29 = vld [vmem:[%s1620_s3 + $0x30] sm:$0xff] (!%p264_p2)  ;;  %vm934_vm2 = vcmask (!%p264_p2), 31744  }
   0xa   : > { %1147 = vmatpush3.bf16.msra.mxu1 (!%p264_p2), %v1144_v7  ;;  %v503_v26 = vld [vmem:[%s1620_s3 + $0x20] sm:$0xff] (!%p264_p2)  ;;  %v506_v30 = vld [vmem:[%s1620_s3 + $0x38] sm:$0xff] (!%p264_p2)  ;;  %v597_v32 = vld [vmem:[%s1621_s4 + $0x8] sm:$0xff] (!%p264_p2) }
   0xb   : > { %1149 = vmatprep.subr.bf16.mxu1 (!%p264_p2), %v1148_v10  ;;  %1153 = vmatprep.subr.bf16.mxu0 (!%p264_p2), %v1152_v14  ;;  %v1160_v28 = vpack.c.bf16 (!%p264_p2), %v504_v27, %v503_v26  ;;  %v1164_v31 = vpack.c.bf16 (!%p264_p2), %v506_v30, %v505_v29  ;;  %v599_v33 = vld [vmem:[%s1621_s4 + $0x18] sm:$0xff] (!%p264_p2)  ;;  %v596_v34 = vld [vmem:[%s1621_s4] sm:$0xff] (!%p264_p2)  ;;  %v598_v36 = vld [vmem:[%s1621_s4 + $0x10] sm:$0xff] (!%p264_p2) }
   0xc   : > { %v1168_v35 = vpack.c.bf16 (!%p264_p2), %v599_v33, %v597_v32  ;;  %v601_v37 = vld [vmem:[%s1621_s4 + $0x28] sm:$0xff] (!%p264_p2)  ;;  %v603_v38 = vld [vmem:[%s1621_s4 + $0x38] sm:$0xff] (!%p264_p2)  ;;  %v1170_v39 = vpack.c.bf16 (!%p264_p2), %v598_v36, %v596_v34  ;;  %v600_v41 = vld [vmem:[%s1621_s4 + $0x20] sm:$0xff] (!%p264_p2) }
   0xd   : > { %s1627_s11 = smov (!%p298_p3, %s998_s11), 7  ;;  %v1172_v40 = vpack.c.bf16 %v603_v38, %v601_v37  ;;  %v602_v42 = vld [vmem:[%s1621_s4 + $0x30] sm:$0xff]  ;;  %v605_v43 = vld [vmem:[%s1621_s4 + $0x48] sm:$0xff]  ;;  %v607_v44 = vld [vmem:[%s1621_s4 + $0x58] sm:$0xff] }
   0xe   : > { %s999_s12 = sshll.u32 %s1627_s11, 3  ;;  %1151 = vmatpush3.bf16.msra.mxu1 %v1148_v10  ;;  %v1174_v45 = vpack.c.bf16 %v602_v42, %v600_v41  ;;  %v1176_v46 = vpack.c.bf16 %v607_v44, %v605_v43  ;;  %v604_v47 = vld [vmem:[%s1621_s4 + $0x40] sm:$0xff]  ;;  %v606_v48 = vld [vmem:[%s1621_s4 + $0x50] sm:$0xff]  ;;  %v609_v49 = vld [vmem:[%s1621_s4 + $0x68] sm:$0xff] }
   0xf   : > { %s301_s15 = scalar_lea.vmem %s1617_s0, %s999_s12  ;;  %1169 = vmatprep.subr.bf16.mxu1 %v1168_v35  ;;  %v611_v50 = vld [vmem:[%s1621_s4 + $0x78] sm:$0xff]  ;;  %v1178_v51 = vpack.c.bf16 %v606_v48, %v604_v47  ;;  %v608_v53 = vld [vmem:[%s1621_s4 + $0x60] sm:$0xff]  ;;  %v610_v54 = vld [vmem:[%s1621_s4 + $0x70] sm:$0xff]  ;;  %s307_s28 = scalar_lea.vmem %s1625_s8, %s999_s12 }
  0x10   : > { %v309_v3 = vld [vmem:[%s301_s15] sm:$0xff]  ;;  %v310_v4 = vld [vmem:[%s301_s15 + $0x8] sm:$0xff]  ;;  %v1180_v52 = vpack.c.bf16 %v611_v50, %v609_v49  ;;  %v615_v56 = vld [vmem:[%s1621_s4 + $0x98] sm:$0xff]  ;;  %v1182_v57 = vpack.c.bf16 %v610_v54, %v608_v53 }
  0x11   : > { %1086 = vmatprep.mubr.msk.f32.mxu0 %vm314_vm3, %v309_v3  ;;  %v613_v55 = vld [vmem:[%s1621_s4 + $0x88] sm:$0xff]  ;;  %v612_v59 = vld [vmem:[%s1621_s4 + $0x80] sm:$0xff]  ;;  %v614_v60 = vld [vmem:[%s1621_s4 + $0x90] sm:$0xff] }
  0x12   : > { %1087 = vmatmul.mubr.msk.f32.vlgmr.msra.gmra.mrb[0].mxu0 %vm314_vm3, %v310_v4  ;;  %v1184_v58 = vpack.c.bf16 %v615_v56, %v613_v55  ;;  %v617_v61 = vld [vmem:[%s1621_s4 + $0xa8] sm:$0xff]  ;;  %v619_v62 = vld [vmem:[%s1621_s4 + $0xb8] sm:$0xff]  ;;  %v1186_v63 = vpack.c.bf16 %v614_v60, %v612_v59  ;;  %v616_v1 = vld [vmem:[%s1621_s4 + $0xa0] sm:$0xff] }
  0x13   : > { %1155 = vmatpush3.bf16.msra.mxu0 %v1152_v14  ;;  %v1188_v0 = vpack.c.bf16 %v619_v62, %v617_v61  ;;  %v618_v2 = vld [vmem:[%s1621_s4 + $0xb0] sm:$0xff]  ;;  %v621_v3 = vld [vmem:[%s1621_s4 + $0xc8] sm:$0xff]  ;;  %v623_v4 = vld [vmem:[%s1621_s4 + $0xd8] sm:$0xff] }
  0x14   : > { %1157 = vmatprep.subr.bf16.mxu0 %v1156_v16  ;;  %v1190_v5 = vpack.c.bf16 %v618_v2, %v616_v1  ;;  %v1192_v6 = vpack.c.bf16 %v623_v4, %v621_v3  ;;  %v410_v7 = vld [vmem:[%s1624_s7 + $0x1] ss:$0 sm:$0xff]  ;;  %v747_v27 = vld [vmem:[%s1622_s5 + $0x88] sm:$0xff]  ;;  %v749_v32 = vld [vmem:[%s1622_s5 + $0x98] sm:$0xff] }
  0x15   : > { %v746_v26 = vld [vmem:[%s1622_s5 + $0x80] sm:$0xff]  ;;  %v731_v30 = vld [vmem:[%s1622_s5 + $0x8] sm:$0xff]  ;;  %v732_v35 = vld [vmem:[%s1622_s5 + $0x10] sm:$0xff] }
  0x16   : > { %v1200_v29 = vpack.c.bf16 %v747_v27, %v746_v26  ;;  %v733_v36 = vld [vmem:[%s1622_s5 + $0x18] sm:$0xff]  ;;  %v750_v37 = vld [vmem:[%s1622_s5 + $0xa0] sm:$0xff]  ;;  %v751_v38 = vld [vmem:[%s1622_s5 + $0xa8] sm:$0xff] }
  0x17   : > { %1159 = vmatpush3.bf16.msra.mxu0 %v1156_v16  ;;  %v620_v16 = vld [vmem:[%s1621_s4 + $0xc0] sm:$0xff]  ;;  %v735_v42 = vld [vmem:[%s1622_s5 + $0x28] sm:$0xff]  ;;  %v752_v43 = vld [vmem:[%s1622_s5 + $0xb0] sm:$0xff] }
  0x18   : > { %1161 = vmatprep.subr.bf16.mxu0 %v1160_v28  ;;  %v734_v41 = vld [vmem:[%s1622_s5 + $0x20] sm:$0xff]  ;;  %v753_v44 = vld [vmem:[%s1622_s5 + $0xb8] sm:$0xff]  ;;  %v736_v47 = vld [vmem:[%s1622_s5 + $0x30] sm:$0xff] }
  0x19   : > { %v737_v48 = vld [vmem:[%s1622_s5 + $0x38] sm:$0xff]  ;;  %v754_v49 = vld [vmem:[%s1622_s5 + $0xc0] sm:$0xff]  ;;  %v755_v50 = vld [vmem:[%s1622_s5 + $0xc8] sm:$0xff] }
  0x1a   : > { %v738_v53 = vld [vmem:[%s1622_s5 + $0x40] sm:$0xff]  ;;  %v739_v54 = vld [vmem:[%s1622_s5 + $0x48] sm:$0xff]  ;;  %v756_v55 = vld [vmem:[%s1622_s5 + $0xd0] sm:$0xff] }
  0x1b   : > { %1163 = vmatpush3.bf16.msra.mxu0 %v1160_v28  ;;  %v730_v28 = vld [vmem:[%s1622_s5] sm:$0xff]  ;;  %v757_v56 = vld [vmem:[%s1622_s5 + $0xd8] sm:$0xff]  ;;  %v740_v59 = vld [vmem:[%s1622_s5 + $0x50] sm:$0xff] }
  0x1c   : > { %1165 = vmatprep.subr.bf16.mxu0 %v1164_v31  ;;  %v1202_v33 = vpack.c.bf16 %v731_v30, %v730_v28  ;;  %v741_v60 = vld [vmem:[%s1622_s5 + $0x58] sm:$0xff]  ;;  %v507_v62 = vld [vmem:[%s1624_s7 + $0x2] ss:$0 sm:$0xff] }
  0x1d   : > { %v1222_v61 = vpack.c.bf16 %v741_v60, %v740_v59 }
  0x1f   : > { %1167 = vmatpush3.bf16.msra.mxu0 %v1164_v31  ;;  %v748_v31 = vld [vmem:[%s1622_s5 + $0x90] sm:$0xff] }
  0x20   : > { %v1204_v34 = vpack.c.bf16 %v749_v32, %v748_v31  ;;  %1201 = vmatprep.subr.bf16.mxu0 %v1200_v29 }
  0xe5   : > { %v1088_v18 = vpop.f32.mrb[0].mxu0 }
  0xe6   : > { %v397_v19 = vadd.f32 %v1088_v18, %v313_v17  ;;  %v391_v20 = vpop.f32.mrb[1].mxu0 }
  0xe7   : > { %v392_v21 = vadd.f32 %v391_v20, %v313_v17  ;;  %v622_v17 = vld [vmem:[%s1621_s4 + $0xd0] sm:$0xff]  ;;  %v627_v20 = vld [vmem:[%s1621_s4 + $0xf8] sm:$0xff] }
  0xe8   : > { %v403_v22 = vmul.f32 0.01, %v397_v19  ;;  %vm401_vm4 = vcmp.gt.f32.partialorder %v397_v19, 0.0  ;;  %v1194_v18 = vpack.c.bf16 %v622_v17, %v620_v16  ;;  %v744_v16 = vld [vmem:[%s1622_s5 + $0x70] sm:$0xff]  ;;  %v745_v17 = vld [vmem:[%s1622_s5 + $0x78] sm:$0xff] }
  0xe9   : > { %vm400_vm5 = vcmp.gt.f32.partialorder %v392_v21, 0.0  ;;  %v402_v23 = vmul.f32 0.01, %v392_v21 }
  0xea   : > { %v405_v25 = vsel %vm401_vm4, %v397_v19, %v403_v22  ;;  %v625_v19 = vld [vmem:[%s1621_s4 + $0xe8] sm:$0xff]  ;;  %v624_v22 = vld [vmem:[%s1621_s4 + $0xe0] sm:$0xff] }
  0xeb   : > { %v404_v24 = vsel %vm400_vm5, %v392_v21, %v402_v23  ;;  %v1196_v21 = vpack.c.bf16 %v627_v20, %v625_v19  ;;  %v626_v23 = vld [vmem:[%s1621_s4 + $0xf0] sm:$0xff]  ;;  %v844_v19 = vld [vmem:[%s1623_s6] sm:$0xff]  ;;  %v845_v20 = vld [vmem:[%s1623_s6 + $0x8] sm:$0xff] }
  0xec   : > { %1097 = vmatprep.mubr.msk.f32.mxu1 %vm411_vm6, %v404_v24  ;;  %v1198_v24 = vpack.c.bf16 %v626_v23, %v624_v22  ;;  %v631_v22 = vlaneseq }
  0xed   : > { %1098 = vmatmul.mubr.msk.f32.vlgmr.msra.gmra.mrb[0].mxu1 %vm411_vm6, %v405_v25  ;;  %v1267_v25 = vmov 0.0  }
  0xee   : > { %1171 = vmatpush1.bf16.msra.mxu1 %v1170_v39  ;;  %705 = vmatprep.mubr.f32.mxu1 %v1267_v25  ;;  %v1206_v39 = vpack.c.bf16 %v733_v36, %v732_v35  ;;  %v632_v23 = vshrl.u32 %v631_v22, 7 }
  0xef   : > { %1173 = vmatprep.subr.bf16.mxu1 %v1172_v40  ;;  %v1208_v40 = vpack.c.bf16 %v751_v38, %v750_v37 }
  0xf0   : > { %v637_v26 = vsub.s32 1, %v632_v23 }
  0xf2   : > { %1175 = vmatpush1.bf16.msra.mxu1 %v1174_v45  ;;  %v1210_v45 = vpack.c.bf16 %v735_v42, %v734_v41 }
  0xf3   : > { %1177 = vmatprep.subr.bf16.mxu1 %v1176_v46  ;;  %v1212_v46 = vpack.c.bf16 %v753_v44, %v752_v43 }
  0xf6   : > { %1179 = vmatpush1.bf16.msra.mxu1 %v1178_v51  ;;  %v1214_v51 = vpack.c.bf16 %v737_v48, %v736_v47  ;;  %v848_v48 = vld [vmem:[%s1623_s6 + $0x20] sm:$0xff] }
  0xf7   : > { %1181 = vmatprep.subr.bf16.mxu1 %v1180_v52  ;;  %v1216_v52 = vpack.c.bf16 %v755_v50, %v754_v49  ;;  %v849_v49 = vld [vmem:[%s1623_s6 + $0x28] sm:$0xff] }
  0xf8   : > { %v1240_v50 = vpack.c.bf16 %v849_v49, %v848_v48 }
  0xfa   : > { %1183 = vmatpush1.bf16.msra.mxu1 %v1182_v57  ;;  %v1218_v57 = vpack.c.bf16 %v739_v54, %v738_v53 }
  0xfb   : > { %1185 = vmatprep.subr.bf16.mxu1 %v1184_v58  ;;  %v1220_v58 = vpack.c.bf16 %v757_v56, %v756_v55  ;;  %v762_v55 = vld [vmem:[%s1624_s7 + $0x4] ss:$0 sm:$0xff] }
  0xfe   : > { %1187 = vmatpush1.bf16.msra.mxu1 %v1186_v63 }
  0xff   : > { %1189 = vmatprep.subr.bf16.mxu1 %v1188_v0 }
 0x102   : > { %1191 = vmatpush1.bf16.msra.mxu1 %v1190_v5 }
 0x103   : > { %1193 = vmatprep.subr.bf16.mxu1 %v1192_v6 }
 0x106   : > { %1195 = vmatpush1.bf16.msra.mxu1 %v1194_v18  ;;  %v1230_v18 = vpack.c.bf16 %v745_v17, %v744_v16 }
 0x107   : > { %1197 = vmatprep.subr.bf16.mxu1 %v1196_v21  ;;  %v1232_v21 = vpack.c.bf16 %v845_v20, %v844_v19 }
 0x10a   : > { %1199 = vmatpush1.bf16.msra.mxu1 %v1198_v24  ;;  %v633_v24 = vsub.s32 0, %v632_v23 }
 0x10b   : > { %1233 = vmatprep.subr.bf16.mxu1 %v1232_v21 }
 0x1c0   : > { %v1099_v8 = vpop.f32.mrb[0].mxu1 }
 0x1c1   : > { %v490_v9 = vadd.f32 %v1099_v8, %v410_v7  ;;  %v484_v10 = vpop.f32.mrb[1].mxu1  ;;  %v759_v8 = vld [vmem:[%s1622_s5 + $0xe8] sm:$0xff] }
 0x1c2   : > { %v485_v11 = vadd.f32 %v484_v10, %v410_v7  ;;  %v758_v7 = vld [vmem:[%s1622_s5 + $0xe0] sm:$0xff] }
 0x1c3   : > { %v496_v12 = vmul.f32 0.01, %v490_v9  ;;  %vm494_vm7 = vcmp.gt.f32.partialorder %v490_v9, 0.0  ;;  %v742_v10 = vld [vmem:[%s1622_s5 + $0x60] sm:$0xff] }
 0x1c4   : > { %vm493_vm8 = vcmp.gt.f32.partialorder %v485_v11, 0.0  ;;  %v495_v13 = vmul.f32 0.01, %v485_v11 }
 0x1c5   : > { %v498_v15 = vsel %vm494_vm7, %v490_v9, %v496_v12  ;;  %v1224_v9 = vpack.c.bf16 %v759_v8, %v758_v7 }
 0x1c6   : > { %v497_v14 = vsel %vm493_vm8, %v485_v11, %v495_v13  ;;  %v743_v11 = vld [vmem:[%s1622_s5 + $0x68] sm:$0xff]  ;;  %v760_v13 = vld [vmem:[%s1622_s5 + $0xf0] sm:$0xff] }
 0x1c7   : > { %1116 = vmatprep.mubr.msk.f32.mxu0 %vm508_vm9, %v497_v14  ;;  %v1226_v12 = vpack.c.bf16 %v743_v11, %v742_v10  ;;  %v761_v14 = vld [vmem:[%s1622_s5 + $0xf8] sm:$0xff] }
 0x1c8   : > { %1117 = vmatmul.mubr.msk.f32.vlgmr.msra.gmra.mrb[2].mxu0 %vm508_vm9, %v498_v15  ;;  %v1228_v15 = vpack.c.bf16 %v761_v14, %v760_v13 }
 0x1c9   : > { %1203 = vmatpush3.bf16.msra.mxu0 %v1202_v33 }
 0x1ca   : > { %1205 = vmatprep.subr.bf16.mxu0 %v1204_v34 }
 0x1cd   : > { %1207 = vmatpush3.bf16.msra.mxu0 %v1206_v39 }
 0x1ce   : > { %1209 = vmatprep.subr.bf16.mxu0 %v1208_v40 }
 0x1d1   : > { %1211 = vmatpush3.bf16.msra.mxu0 %v1210_v45  ;;  %v846_v45 = vld [vmem:[%s1623_s6 + $0x10] sm:$0xff] }
 0x1d2   : > { %1213 = vmatprep.subr.bf16.mxu0 %v1212_v46  ;;  %v847_v46 = vld [vmem:[%s1623_s6 + $0x18] sm:$0xff] }
 0x1d3   : > { %v1236_v47 = vpack.c.bf16 %v847_v46, %v846_v45 }
 0x1d5   : > { %1215 = vmatpush3.bf16.msra.mxu0 %v1214_v51  ;;  %v850_v51 = vld [vmem:[%s1623_s6 + $0x30] sm:$0xff] }
 0x1d6   : > { %1217 = vmatprep.subr.bf16.mxu0 %v1216_v52  ;;  %v851_v52 = vld [vmem:[%s1623_s6 + $0x38] sm:$0xff] }
 0x1d7   : > { %v1244_v53 = vpack.c.bf16 %v851_v52, %v850_v51 }
 0x1d9   : > { %1219 = vmatpush3.bf16.msra.mxu0 %v1218_v57 }
 0x1da   : > { %1221 = vmatprep.subr.bf16.mxu0 %v1220_v58 }
 0x1dd   : > { %1223 = vmatpush3.bf16.msra.mxu0 %v1222_v61 }
 0x1de   : > { %1225 = vmatprep.subr.bf16.mxu0 %v1224_v9 }
 0x1e1   : > { %1227 = vmatpush3.bf16.msra.mxu0 %v1226_v12 }
 0x1e2   : > { %1229 = vmatprep.subr.bf16.mxu0 %v1228_v15 }
 0x1e5   : > { %1231 = vmatpush3.bf16.msra.mxu0 %v1230_v18 }
 0x29b   : > { %v1118_v63 = vpop.f32.mrb[2].mxu0 }
 0x29c   : > { %v581_v0 = vpop.f32.mrb[3].mxu0  ;;  %v587_v1 = vadd.f32 %v1118_v63, %v507_v62 }
 0x29d   : > { %v582_v2 = vadd.f32 %v581_v0, %v507_v62 }
 0x29e   : > { %v593_v4 = vmul.f32 0.01, %v587_v1  ;;  %vm591_vm11 = vcmp.gt.f32.partialorder %v587_v1, 0.0 }
 0x29f   : > { %vm590_vm10 = vcmp.gt.f32.partialorder %v582_v2, 0.0  ;;  %v592_v3 = vmul.f32 0.01, %v582_v2 }
 0x2a0   : > { %v595_v6 = vsel %vm591_vm11, %v587_v1, %v593_v4 }
 0x2a1   : > { %v594_v5 = vsel %vm590_vm10, %v582_v2, %v592_v3  ;;  %v852_v3 = vld [vmem:[%s1624_s7 + $0x5] ss:$0 sm:$0xff] }
 0x2a2   : > { %706 = vmatmul.mubr.f32.vlgmr.msra.gmra.mrb[2].mxu1 %v594_v5 }
 0x2a3   : > { %711 = vmatprep.mubr.f32.mxu1 %v1267_v25  ;;  %1235 = vmatpush3.bf16.msra.mxu1 %v1232_v21  ;;  %v1009_v25 = vld [vmem:[%s1624_s7 + $0x3] ss:$8 sm:$0x3] }
 0x2a4   : > { %v634_v27 = vrot.slane %v1009_v25, %v633_v24  ;;  %v638_v28 = vrot.slane %v1009_v25, %v637_v26  ;;  %1237 = vmatprep.subr.bf16.mxu1 %v1236_v47 }
 0x2a6   : > { %712 = vmatmul.mubr.f32.gmra.mrb[4].mxu1 %v595_v6 }
 0x2a7   : > { %1239 = vmatpush3.bf16.msra.mxu1 %v1236_v47 }
 0x2a8   : > { %1241 = vmatprep.subr.bf16.mxu1 %v1240_v50 }
 0x2ab   : > { %1243 = vmatpush3.bf16.msra.mxu1 %v1240_v50 }
 0x2ac   : > { %1245 = vmatprep.subr.bf16.mxu1 %v1244_v53 }
 0x2af   : > { %1247 = vmatpush3.bf16.msra.mxu1 %v1244_v53 }
 0x375   : > { %v707_v29 = vpop.f32.mrb[2].mxu1 }
 0x376   : > { %v708_v30 = vadd.f32 %v707_v29, %v634_v27  ;;  %v709_v31 = vpop.f32.mrb[3].mxu1 }
 0x377   : > { %v710_v32 = vadd.f32 %v709_v31, %v638_v28 }
 0x378   : > { %v722_v33 = vmul.f32 0.01, %v708_v30  ;;  %vm718_vm12 = vcmp.gt.f32.partialorder %v708_v30, 0.0 }
 0x379   : > { %v723_v34 = vmul.f32 0.01, %v710_v32  ;;  %v713_v35 = vpop.f32.mrb[4].mxu1  ;;  %vm719_vm13 = vcmp.gt.f32.partialorder %v710_v32, 0.0 }
 0x37a   : > { %v714_v36 = vadd.f32 %v713_v35, %v634_v27  ;;  %v715_v37 = vpop.f32.mrb[5].mxu1  ;;  %v726_v41 = vsel %vm718_vm12, %v708_v30, %v722_v33 }
 0x37b   : > { %v716_v38 = vadd.f32 %v715_v37, %v638_v28  ;;  %v727_v39 = vsel %vm719_vm13, %v710_v32, %v723_v34 }
 0x37c   : > { %v724_v40 = vmul.f32 0.01, %v714_v36  ;;  %827 = vmatprep.mubr.f32.mxu0 %v727_v39  ;;  %vm720_vm15 = vcmp.gt.f32.partialorder %v714_v36, 0.0 }
 0x37d   : > { %v725_v42 = vmul.f32 0.01, %v716_v38  ;;  %828 = vmatmul.mubr.f32.vlgmr.msra.gmra.mrb[4].mxu0 %v726_v41  ;;  %vm721_vm14 = vcmp.gt.f32.partialorder %v716_v38, 0.0 }
 0x37e   : > { %v728_v44 = vsel %vm720_vm15, %v714_v36, %v724_v40 }
 0x37f   : > { %v729_v43 = vsel %vm721_vm14, %v716_v38, %v725_v42 }
 0x380   : > { %832 = vmatprep.mubr.f32.mxu0 %v729_v43 }
 0x381   : > { %833 = vmatmul.mubr.f32.gmra.mrb[6].mxu0 %v728_v44 }
 0x450   : > { %v1066_v54 = vpop.f32.mrb[4].mxu0 }
 0x451   : > { %v1067_v56 = vpop.f32.mrb[5].mxu0 }
 0x452   : > { %v1068_v57 = vadd.f32 %v1067_v56, %v1066_v54 }
 0x454   : > { %v830_v58 = vadd.f32 %v1068_v57, %v762_v55  ;;  %v1069_v59 = vpop.f32.mrb[6].mxu0 }
 0x455   : > { %v1070_v60 = vpop.f32.mrb[7].mxu0 }
 0x456   : > { %v840_v61 = vmul.f32 0.01, %v830_v58  ;;  %v1071_v62 = vadd.f32 %v1070_v60, %v1069_v59  ;;  %vm838_vm0 = vcmp.gt.f32.partialorder %v830_v58, 0.0 }
 0x458   : > { %v835_v63 = vadd.f32 %v1071_v62, %v762_v55  ;;  %v842_v0 = vsel %vm838_vm0, %v830_v58, %v840_v61 }
 0x459   : > { %1135 = vmatprep.mubr.msk.f32.mxu1 %vm508_vm9, %v842_v0 }
 0x45a   : > { %vm839_vm1 = vcmp.gt.f32.partialorder %v835_v63, 0.0  ;;  %v841_v1 = vmul.f32 0.01, %v835_v63 }
 0x45c   : > { %v843_v2 = vsel %vm839_vm1, %v835_v63, %v841_v1 }
 0x45d   : > { %1136 = vmatmul.mubr.msk.f32.vlgmr.msra.gmra.mrb[6].mxu1 %vm508_vm9, %v843_v2 }
 0x530   : > { %v1137_v4 = vpop.f32.mrb[6].mxu1 }
 0x531   : > { %v925_v5 = vpop.f32.mrb[7].mxu1  ;;  %v931_v7 = vadd.f32 %v1137_v4, %v852_v3 }
 0x532   : > { %v926_v6 = vadd.f32 %v925_v5, %v852_v3 }
 0x533   : > { %936 = vst.msk [vmem:[%s307_s28 + $0x8] sm:$0xff] %vm934_vm2, %v931_v7 }
 0x534   : > { %935 = vst.msk [vmem:[%s307_s28] sm:$0xff] %vm934_vm2, %v926_v6 }
 0x535 PF: > { %s18_s27 = sadd.s32 1, %s1264_s27  }
 0x536   : > { %p15_p4 = scmp.ge.s32.totalorder %s18_s27, 6  }
 0x538   :  { %17 = sbr.rel (!%p15_p4) target bundleno = 1 (0x1), region = 83 }

</bundles_post_ra>
